<compile_context>
chip_gen: v6e
topology: v6e:2x2x1
jax: 0.10.0
libtpu: 0.0.40
codegen_flags: <defaults>
</compile_context>

<pallas_src>
import functools

import jax
import jax.numpy as jnp
from jax.experimental import pallas as pl
from jax.experimental.pallas import tpu as pltpu


# ---------------------------------------------------------------------------
# Kernels
# ---------------------------------------------------------------------------

def _rope_kernel_perhead(tab_ref, q_ref, k_ref, xq_ref, xk_ref, *, hq, hk, d):
    """D % 128 == 0 path: apply the (TS, D) tables per 128-aligned head slice.

    tab_ref : (TS, 3*D) in compute dtype, packed [cos | sin_next | sin_prev]
      sin_next = -sin on even lanes, 0 on odd lanes   (multiplies x[j+1])
      sin_prev = +sin on odd lanes,  0 on even lanes  (multiplies x[j-1])
    q_ref/xq_ref : (1, TS, Hq*D);  k_ref/xk_ref : (1, TS, Hk*D)
    """
    cdt = tab_ref.dtype
    c = tab_ref[:, 0 * d:1 * d]
    sa = tab_ref[:, 1 * d:2 * d]
    sb = tab_ref[:, 2 * d:3 * d]

    def apply(x_ref, o_ref, h):
        for i in range(h):                                   # static unroll over heads
            lo, hi = i * d, (i + 1) * d                      # 128-lane aligned
            x = x_ref[0, :, lo:hi].astype(cdt)               # (TS, D)
            x_next = pltpu.roll(x, shift=d - 1, axis=1)      # x[(j+1) % D]
            x_prev = pltpu.roll(x, shift=1, axis=1)          # x[(j-1) % D]
            # Wraparound lanes are killed by the zero lanes of sa / sb.
            o_ref[0, :, lo:hi] = (x * c + x_next * sa + x_prev * sb).astype(o_ref.dtype)

    apply(q_ref, xq_ref, hq)
    apply(k_ref, xk_ref, hk)


def _rope_kernel_tiled(tab_ref, q_ref, k_ref, xq_ref, xk_ref, *scratch, hq, hk, d):
    """D % 128 != 0 path: head-replicated tables cached in VMEM scratch.

    scratch[0:3] : (TS, Hq*D) cos/sin_next/sin_prev (compute dtype)
    scratch[3:6] : (TS, Hk*D) k-tables, only when hk != hq (GQA)
    Batch is the innermost grid axis, so the tables only need rebuilding when the
    sequence tile changes, i.e. when program_id(1) == 0.
    """
    cq_ref, saq_ref, sbq_ref = scratch[0:3]
    gqa = hk != hq

    @pl.when(pl.program_id(1) == 0)
    def _fill_tables():
        c = tab_ref[:, 0 * d:1 * d]
        sa = tab_ref[:, 1 * d:2 * d]
        sb = tab_ref[:, 2 * d:3 * d]
        cq_ref[...] = jnp.tile(c, (1, hq))
        saq_ref[...] = jnp.tile(sa, (1, hq))
        sbq_ref[...] = jnp.tile(sb, (1, hq))
        if gqa:
            ck_ref, sak_ref, sbk_ref = scratch[3:6]
            ck_ref[...] = jnp.tile(c, (1, hk))
            sak_ref[...] = jnp.tile(sa, (1, hk))
            sbk_ref[...] = jnp.tile(sb, (1, hk))

    def apply(x_ref, o_ref, c_ref, sa_ref, sb_ref):
        x = x_ref[0].astype(c_ref.dtype)                     # (TS, H*D)
        hd = x.shape[-1]
        x_next = pltpu.roll(x, shift=hd - 1, axis=1)         # x[(j+1) % HD]
        x_prev = pltpu.roll(x, shift=1, axis=1)              # x[(j-1) % HD]
        # Cross-pair / cross-head wraparound lanes are killed by the zero lanes of
        # sin_next / sin_prev, so the flattened-head roll is exact.
        o_ref[0] = (x * c_ref[...] + x_next * sa_ref[...] + x_prev * sb_ref[...]
                    ).astype(o_ref.dtype)

    apply(q_ref, xq_ref, cq_ref, saq_ref, sbq_ref)
    if gqa:
        apply(k_ref, xk_ref, *scratch[3:6])
    else:
        apply(k_ref, xk_ref, cq_ref, saq_ref, sbq_ref)


# ---------------------------------------------------------------------------
# Hardware-aware helpers
# ---------------------------------------------------------------------------

def _vmem_capacity_bytes() -> int:
    try:
        cap = getattr(pltpu.get_tpu_info(), "vmem_capacity_bytes", None)
        if cap:
            return int(cap)
    except Exception:
        pass
    try:
        kind = jax.devices()[0].device_kind.lower()
        if ("v7" in kind) or ("7x" in kind):
            return 64 * 1024 * 1024
        if any(t in kind for t in ("v4", "v5", "v6")):
            return 128 * 1024 * 1024
    except Exception:
        pass
    return 64 * 1024 * 1024          # conservative default (v7x-sized)


def _bf16_compute_ok() -> bool:
    # bf16 VALU exists on v6e / v7x; v5e and older lack it -> keep f32 there.
    try:
        kind = jax.devices()[0].device_kind.lower()
    except Exception:
        return False
    return ("v6" in kind) or ("v7" in kind) or ("7x" in kind)


# ---------------------------------------------------------------------------
# Module
# ---------------------------------------------------------------------------

class RotaryPositionEmbedding1DV1:
    """JAX/Pallas port of the PyTorch RotaryPositionEmbedding1DV1."""

    def __init__(self, dim: int, max_seq_len: int, rope_theta: float = 10000.0):
        assert dim % 2 == 0, "interleaved RoPE requires an even head_dim"
        self.mscale = 1.0
        self.dim = dim
        self.max_seq_len_cached = max_seq_len

        inv_freq = 1.0 / (
            rope_theta ** (jnp.arange(0, dim, 2, dtype=jnp.float32) / dim)
        )                                                      # (D/2,)
        seq = jnp.arange(max_seq_len, dtype=jnp.float32)       # (S_max,)
        freqs = jnp.einsum("i,j->ij", seq, inv_freq)           # (S_max, D/2)
        emb = jnp.stack((freqs, freqs), axis=-1).reshape(max_seq_len, dim)

        # caches kept as (S_max, D) f32; broadcast over batch/heads happens in-kernel
        self.cos_cached = jnp.cos(emb) * self.mscale
        self.sin_cached = jnp.sin(emb) * self.mscale

        # rotate_half sign + parity folded into two masked sin tables:
        #   out[2i]   = x[2i]  *cos - x[2i+1]*sin   -> sin_next nonzero on even lanes
        #   out[2i+1] = x[2i+1]*cos + x[2i]  *sin   -> sin_prev nonzero on odd lanes
        parity = (jnp.arange(dim) % 2).astype(jnp.float32)     # 0 even, 1 odd
        sin_next = -self.sin_cached * (1.0 - parity)[None, :]
        sin_prev = self.sin_cached * parity[None, :]
        # Single packed table -> one DMA stream per sequence tile.
        self.packed_table = jnp.concatenate(
            [self.cos_cached, sin_next, sin_prev], axis=-1)    # (S_max, 3*D) f32

    @staticmethod
    def _pick_tile(S, hdq, hdk, d, q_dtype, k_dtype, c_dtype, per_head, gqa, budget):
        """Largest sequence tile that keeps double-buffered DMA blocks + table
        scratch + live temps inside the generation-aware VMEM budget."""
        qb = jnp.dtype(q_dtype).itemsize
        kb = jnp.dtype(k_dtype).itemsize
        cb = jnp.dtype(c_dtype).itemsize
        # double-buffered pipeline blocks (q, xq, k, xk, packed table), per seq row
        pipe = 2 * (2 * hdq * qb + 2 * hdk * kb + 3 * d * cb)
        if per_head:
            scratch = 0
            temps = 8 * d * cb                # per-head temps + table slices
        else:
            scratch = 3 * hdq * cb + (3 * hdk * cb if gqa else 0)
            temps = 6 * max(hdq, hdk) * cb    # x, rolls, products at full width
        per_row = pipe + scratch + temps
        sub = {4: 8, 2: 16, 1: 32}.get(min(qb, kb), 8)   # sublane packing multiple
        ts = max(sub, (budget // per_row) // sub * sub)
        return int(S) if S <= ts else int(ts)

    def __call__(self, q, k, input_pos=None, seq_len=None, tile_seq=None,
                 compute_dtype=None):
        B, S, Hq, D = q.shape
        Bk, Sk, Hk, Dk = k.shape
        assert (B, S, D) == (Bk, Sk, Dk), "q/k must share batch, seq and head_dim"
        assert D == self.dim

        # TODO(synk): for decode-style calls, input_pos could be scalar-prefetched and
        # gathered in-kernel with a pl.Element index_map instead of this XLA gather.
        if input_pos is not None:
            tab = self.packed_table[input_pos]             # (S, 3D)
        else:
            assert seq_len is not None and self.packed_table.shape[0] >= seq_len
            tab = self.packed_table[:seq_len]
        assert tab.shape[0] == S

        if compute_dtype is None:
            compute_dtype = (jnp.bfloat16
                             if (q.dtype == jnp.bfloat16 and k.dtype == jnp.bfloat16
                                 and _bf16_compute_ok())
                             else jnp.float32)
        tab = tab.astype(compute_dtype)                    # tables pre-cast once

        HDq, HDk = Hq * D, Hk * D
        qf = q.reshape(B, S, HDq)                          # free reshape (contiguous)
        kf = k.reshape(B, S, HDk)
        per_head = (D % 128 == 0)
        gqa = Hk != Hq

        # Generation-aware VMEM budgeting.
        cap = _vmem_capacity_bytes()
        if cap >= 100 * 1024 * 1024:                       # v5e / v6e: 128 MiB physical
            budget, vmem_limit = 72 * 1024 * 1024, 100 * 1024 * 1024
        else:                                              # v7x: 64 MiB physical
            budget, vmem_limit = 26 * 1024 * 1024, 48 * 1024 * 1024

        if tile_seq is None:
            ts = self._pick_tile(S, HDq, HDk, D, q.dtype, k.dtype, compute_dtype,
                                 per_head, gqa, budget)
        else:
            ts = int(tile_seq)
            assert ts == S or ts % 8 == 0, "tile_seq must be a multiple of 8 or == S"
        ns = pl.cdiv(S, ts)

        if per_head:
            kernel = functools.partial(_rope_kernel_perhead, hq=Hq, hk=Hk, d=D)
            scratch_shapes = []
        else:
            kernel = functools.partial(_rope_kernel_tiled, hq=Hq, hk=Hk, d=D)
            scratch_shapes = [pltpu.VMEM((ts, HDq), compute_dtype)] * 3
            if gqa:
                scratch_shapes = scratch_shapes + [pltpu.VMEM((ts, HDk), compute_dtype)] * 3

        # Grid: (sequence tiles, batch).  Batch innermost so the packed table block
        # (index constant in b) stays resident and scratch tables are reused over b.
        grid_spec = pltpu.PrefetchScalarGridSpec(
            num_scalar_prefetch=0,
            grid=(ns, B),
            in_specs=[
                pl.BlockSpec((ts, 3 * D), lambda s, b: (s, 0)),      # packed tables
                pl.BlockSpec((1, ts, HDq), lambda s, b: (b, s, 0)),  # q
                pl.BlockSpec((1, ts, HDk), lambda s, b: (b, s, 0)),  # k
            ],
            out_specs=[
                pl.BlockSpec((1, ts, HDq), lambda s, b: (b, s, 0)),  # xq
                pl.BlockSpec((1, ts, HDk), lambda s, b: (b, s, 0)),  # xk
            ],
            scratch_shapes=scratch_shapes,
        )

        xqf, xkf = pl.pallas_call(
            kernel,
            out_shape=(jax.ShapeDtypeStruct((B, S, HDq), q.dtype),
                       jax.ShapeDtypeStruct((B, S, HDk), k.dtype)),
            grid_spec=grid_spec,
            compiler_params=pltpu.CompilerParams(
                # seq-tile axis may be sharded across v7x's 2 TensorCores; batch stays
                # sequential per core (keeps table residency / scratch reuse valid).
                # Measured-neutral on single-TC v5e/v6e.
                dimension_semantics=("parallel", "arbitrary"),
                vmem_limit_bytes=int(vmem_limit),
            ),
        )(tab, qf, kf)

        return xqf.reshape(B, S, Hq, D), xkf.reshape(B, S, Hk, D)


# ---------------------------------------------------------------------------
# Pure-JAX reference (reproduces the PyTorch forward exactly)
# ---------------------------------------------------------------------------

def _reference_rope(q, k, cos, sin):
    def rotate_half(x):
        xr = x.reshape(*x.shape[:-1], -1, 2)
        x1, x2 = xr[..., 0], xr[..., 1]
        return jnp.stack((-x2, x1), axis=-1).reshape(x.shape)

    c = cos[None, :, None, :]
    s = sin[None, :, None, :]
    xq = q * c + rotate_half(q) * s
    xk = k * c + rotate_half(k) * s
    return xq.astype(q.dtype), xk.astype(k.dtype)


if __name__ == "__main__":
    key = jax.random.PRNGKey(0)
    kq, kk, kq2, kk2, kq3, kk3, kq4, kk4 = jax.random.split(key, 8)

    # Test 1: f32, D=32 (<128) -> scratch-cached table path, single S tile.
    B, S, H, D = 2, 8, 4, 32
    rope = RotaryPositionEmbedding1DV1(dim=D, max_seq_len=16, rope_theta=10000.0)
    q = jax.random.normal(kq, (B, S, H, D), dtype=jnp.float32)
    k = jax.random.normal(kk, (B, S, H, D), dtype=jnp.float32)
    xq, xk = rope(q, k, seq_len=S)
    jax.block_until_ready((xq, xk))
    rq, rk = _reference_rope(q, k, rope.cos_cached[:S], rope.sin_cached[:S])
    assert xq.dtype == q.dtype and xk.dtype == k.dtype
    assert jnp.allclose(xq, rq, atol=1e-5, rtol=1e-5)
    assert jnp.allclose(xk, rk, atol=1e-5, rtol=1e-5)

    # Test 2: bf16, GQA k, multi-tile sequence, input_pos gather (scratch path;
    # bf16 compute on v6e/v7x, f32 elsewhere).
    B2, S2, Hq2, Hk2, D2 = 2, 16, 4, 2, 32
    rope2 = RotaryPositionEmbedding1DV1(dim=D2, max_seq_len=64, rope_theta=10000.0)
    q2 = jax.random.normal(kq2, (B2, S2, Hq2, D2), dtype=jnp.float32).astype(jnp.bfloat16)
    k2 = jax.random.normal(kk2, (B2, S2, Hk2, D2), dtype=jnp.float32).astype(jnp.bfloat16)
    pos = jnp.arange(4, 4 + S2)
    xq2, xk2 = rope2(q2, k2, input_pos=pos, tile_seq=8)
    jax.block_until_ready((xq2, xk2))
    rq2, rk2 = _reference_rope(q2, k2, rope2.cos_cached[pos], rope2.sin_cached[pos])
    assert xq2.dtype == q2.dtype and xk2.dtype == k2.dtype
    assert jnp.allclose(xq2.astype(jnp.float32), rq2.astype(jnp.float32), atol=5e-2, rtol=5e-2)
    assert jnp.allclose(xk2.astype(jnp.float32), rk2.astype(jnp.float32), atol=5e-2, rtol=5e-2)

    # Test 3: f32, D=128 -> per-head (no table expansion) path, GQA k.
    B3, S3, Hq3, Hk3, D3 = 2, 16, 2, 1, 128
    rope3 = RotaryPositionEmbedding1DV1(dim=D3, max_seq_len=32, rope_theta=10000.0)
    q3 = jax.random.normal(kq3, (B3, S3, Hq3, D3), dtype=jnp.float32)
    k3 = jax.random.normal(kk3, (B3, S3, Hk3, D3), dtype=jnp.float32)
    xq3, xk3 = rope3(q3, k3, seq_len=S3)
    jax.block_until_ready((xq3, xk3))
    rq3, rk3 = _reference_rope(q3, k3, rope3.cos_cached[:S3], rope3.sin_cached[:S3])
    assert jnp.allclose(xq3, rq3, atol=1e-5, rtol=1e-5)
    assert jnp.allclose(xk3, rk3, atol=1e-5, rtol=1e-5)

    # Test 4: bf16, D=128 -> per-head path with default compute (bf16 on v6e/v7x).
    B4, S4, H4, D4 = 2, 16, 2, 128
    rope4 = RotaryPositionEmbedding1DV1(dim=D4, max_seq_len=32, rope_theta=10000.0)
    q4 = jax.random.normal(kq4, (B4, S4, H4, D4), dtype=jnp.float32).astype(jnp.bfloat16)
    k4 = jax.random.normal(kk4, (B4, S4, H4, D4), dtype=jnp.float32).astype(jnp.bfloat16)
    xq4, xk4 = rope4(q4, k4, seq_len=S4)
    jax.block_until_ready((xq4, xk4))
    rq4, rk4 = _reference_rope(q4, k4, rope4.cos_cached[:S4], rope4.sin_cached[:S4])
    assert jnp.allclose(xq4.astype(jnp.float32), rq4.astype(jnp.float32), atol=5e-2, rtol=5e-2)
    assert jnp.allclose(xk4.astype(jnp.float32), rk4.astype(jnp.float32), atol=5e-2, rtol=5e-2)

    print("KERNEL_OK")
</pallas_src>

<mosaic_0001>
module attributes {stable_mosaic.version = 11 : i64} {
  func.func @_rope_kernel_tiled(%arg0: i32, %arg1: i32, %arg2: memref<8x96xf32, #tpu.memory_space<vmem>>, %arg3: memref<1x8x128xf32, #tpu.memory_space<vmem>>, %arg4: memref<1x8x128xf32, #tpu.memory_space<vmem>>, %arg5: memref<1x8x128xf32, #tpu.memory_space<vmem>>, %arg6: memref<1x8x128xf32, #tpu.memory_space<vmem>>, %arg7: memref<8x128xf32, #tpu.memory_space<vmem>>, %arg8: memref<8x128xf32, #tpu.memory_space<vmem>>, %arg9: memref<8x128xf32, #tpu.memory_space<vmem>>) attributes {dimension_semantics = [#tpu.dimension_semantics<parallel>, #tpu.dimension_semantics<arbitrary>], iteration_bounds = array<i64: 1, 2>, scalar_prefetch = 0 : i64, scratch_operands = 3 : i64, tpu.core_type = #tpu.core_type<tc>, window_params = [{transform_indices = @transform_0, window_bounds = array<i64: 8, 96>}, {transform_indices = @transform_1, window_bounds = array<i64: 1, 8, 128>}, {transform_indices = @transform_2, window_bounds = array<i64: 1, 8, 128>}, {transform_indices = @transform_3, window_bounds = array<i64: 1, 8, 128>}, {transform_indices = @transform_4, window_bounds = array<i64: 1, 8, 128>}]} {
    %c0_i32 = arith.constant 0 : i32
    %0 = arith.cmpi eq, %arg1, %c0_i32 : i32
    %1 = arith.extui %0 : i1 to i32
    %c0_i32_0 = arith.constant 0 : i32
    %2 = arith.cmpi ne, %1, %c0_i32_0 : i32
    scf.if %2 {
      %c0_26 = arith.constant 0 : index
      %c0_27 = arith.constant 0 : index
      %33 = vector.load %arg2[%c0_26, %c0_27] : memref<8x96xf32, #tpu.memory_space<vmem>>, vector<8x32xf32>
      %c0_28 = arith.constant 0 : index
      %c32 = arith.constant 32 : index
      %34 = vector.load %arg2[%c0_28, %c32] : memref<8x96xf32, #tpu.memory_space<vmem>>, vector<8x32xf32>
      %c0_29 = arith.constant 0 : index
      %c64 = arith.constant 64 : index
      %35 = vector.load %arg2[%c0_29, %c64] : memref<8x96xf32, #tpu.memory_space<vmem>>, vector<8x32xf32>
      %36 = tpu.concatenate %33, %33, %33, %33 in 1 : vector<8x32xf32>, vector<8x32xf32>, vector<8x32xf32>, vector<8x32xf32> -> vector<8x128xf32>
      %c0_30 = arith.constant 0 : index
      %c0_31 = arith.constant 0 : index
      %37 = vector.load %arg7[%c0_30, %c0_31] : memref<8x128xf32, #tpu.memory_space<vmem>>, vector<8x128xf32>
      tpu.vector_store %arg7[%c0_30, %c0_31], %36 {strides = array<i32>} : memref<8x128xf32, #tpu.memory_space<vmem>>, vector<8x128xf32>,
      %38 = tpu.concatenate %34, %34, %34, %34 in 1 : vector<8x32xf32>, vector<8x32xf32>, vector<8x32xf32>, vector<8x32xf32> -> vector<8x128xf32>
      %c0_32 = arith.constant 0 : index
      %c0_33 = arith.constant 0 : index
      %39 = vector.load %arg8[%c0_32, %c0_33] : memref<8x128xf32, #tpu.memory_space<vmem>>, vector<8x128xf32>
      tpu.vector_store %arg8[%c0_32, %c0_33], %38 {strides = array<i32>} : memref<8x128xf32, #tpu.memory_space<vmem>>, vector<8x128xf32>,
      %40 = tpu.concatenate %35, %35, %35, %35 in 1 : vector<8x32xf32>, vector<8x32xf32>, vector<8x32xf32>, vector<8x32xf32> -> vector<8x128xf32>
      %c0_34 = arith.constant 0 : index
      %c0_35 = arith.constant 0 : index
      %41 = vector.load %arg9[%c0_34, %c0_35] : memref<8x128xf32, #tpu.memory_space<vmem>>, vector<8x128xf32>
      tpu.vector_store %arg9[%c0_34, %c0_35], %40 {strides = array<i32>} : memref<8x128xf32, #tpu.memory_space<vmem>>, vector<8x128xf32>,
    } else {
    }
    %c0 = arith.constant 0 : index
    %c0_1 = arith.constant 0 : index
    %c0_2 = arith.constant 0 : index
    %3 = vector.load %arg3[%c0, %c0_1, %c0_2] : memref<1x8x128xf32, #tpu.memory_space<vmem>>, vector<1x8x128xf32>
    %4 = vector.shape_cast %3 : vector<1x8x128xf32> to vector<8x128xf32>
    %c127_i32 = arith.constant 127 : i32
    %5 = tpu.dynamic_rotate %4 by %c127_i32 dim 1 : vector<8x128xf32>, i32 -> vector<8x128xf32>
    %c1_i32 = arith.constant 1 : i32
    %6 = tpu.dynamic_rotate %4 by %c1_i32 dim 1 : vector<8x128xf32>, i32 -> vector<8x128xf32>
    %c0_3 = arith.constant 0 : index
    %c0_4 = arith.constant 0 : index
    %7 = vector.load %arg7[%c0_3, %c0_4] : memref<8x128xf32, #tpu.memory_space<vmem>>, vector<8x128xf32>
    %8 = arith.mulf %4, %7 : vector<8x128xf32>
    %c0_5 = arith.constant 0 : index
    %c0_6 = arith.constant 0 : index
    %9 = vector.load %arg8[%c0_5, %c0_6] : memref<8x128xf32, #tpu.memory_space<vmem>>, vector<8x128xf32>
    %10 = arith.mulf %5, %9 : vector<8x128xf32>
    %11 = arith.addf %8, %10 : vector<8x128xf32>
    %c0_7 = arith.constant 0 : index
    %c0_8 = arith.constant 0 : index
    %12 = vector.load %arg9[%c0_7, %c0_8] : memref<8x128xf32, #tpu.memory_space<vmem>>, vector<8x128xf32>
    %13 = arith.mulf %6, %12 : vector<8x128xf32>
    %14 = arith.addf %11, %13 : vector<8x128xf32>
    %c0_9 = arith.constant 0 : index
    %c0_10 = arith.constant 0 : index
    %c0_11 = arith.constant 0 : index
    %15 = vector.load %arg5[%c0_9, %c0_10, %c0_11] : memref<1x8x128xf32, #tpu.memory_space<vmem>>, vector<1x8x128xf32>
    %16 = vector.shape_cast %15 : vector<1x8x128xf32> to vector<8x128xf32>
    %17 = vector.shape_cast %14 : vector<8x128xf32> to vector<1x8x128xf32>
    tpu.vector_store %arg5[%c0_9, %c0_10, %c0_11], %17 {strides = array<i32>} : memref<1x8x128xf32, #tpu.memory_space<vmem>>, vector<1x8x128xf32>,
    %c0_12 = arith.constant 0 : index
    %c0_13 = arith.constant 0 : index
    %c0_14 = arith.constant 0 : index
    %18 = vector.load %arg4[%c0_12, %c0_13, %c0_14] : memref<1x8x128xf32, #tpu.memory_space<vmem>>, vector<1x8x128xf32>
    %19 = vector.shape_cast %18 : vector<1x8x128xf32> to vector<8x128xf32>
    %c127_i32_15 = arith.constant 127 : i32
    %20 = tpu.dynamic_rotate %19 by %c127_i32_15 dim 1 : vector<8x128xf32>, i32 -> vector<8x128xf32>
    %c1_i32_16 = arith.constant 1 : i32
    %21 = tpu.dynamic_rotate %19 by %c1_i32_16 dim 1 : vector<8x128xf32>, i32 -> vector<8x128xf32>
    %c0_17 = arith.constant 0 : index
    %c0_18 = arith.constant 0 : index
    %22 = vector.load %arg7[%c0_17, %c0_18] : memref<8x128xf32, #tpu.memory_space<vmem>>, vector<8x128xf32>
    %23 = arith.mulf %19, %22 : vector<8x128xf32>
    %c0_19 = arith.constant 0 : index
    %c0_20 = arith.constant 0 : index
    %24 = vector.load %arg8[%c0_19, %c0_20] : memref<8x128xf32, #tpu.memory_space<vmem>>, vector<8x128xf32>
    %25 = arith.mulf %20, %24 : vector<8x128xf32>
    %26 = arith.addf %23, %25 : vector<8x128xf32>
    %c0_21 = arith.constant 0 : index
    %c0_22 = arith.constant 0 : index
    %27 = vector.load %arg9[%c0_21, %c0_22] : memref<8x128xf32, #tpu.memory_space<vmem>>, vector<8x128xf32>
    %28 = arith.mulf %21, %27 : vector<8x128xf32>
    %29 = arith.addf %26, %28 : vector<8x128xf32>
    %c0_23 = arith.constant 0 : index
    %c0_24 = arith.constant 0 : index
    %c0_25 = arith.constant 0 : index
    %30 = vector.load %arg6[%c0_23, %c0_24, %c0_25] : memref<1x8x128xf32, #tpu.memory_space<vmem>>, vector<1x8x128xf32>
    %31 = vector.shape_cast %30 : vector<1x8x128xf32> to vector<8x128xf32>
    %32 = vector.shape_cast %29 : vector<8x128xf32> to vector<1x8x128xf32>
    tpu.vector_store %arg6[%c0_23, %c0_24, %c0_25], %32 {strides = array<i32>} : memref<1x8x128xf32, #tpu.memory_space<vmem>>, vector<1x8x128xf32>,
    return
  }
  func.func @transform_0(%arg0: i32, %arg1: i32) -> (i32, i32) {
    %c0_i32 = arith.constant 0 : i32
    %c0_i32_0 = arith.constant 0 : i32
    return %arg0, %c0_i32 : i32, i32
  }
  func.func @transform_1(%arg0: i32, %arg1: i32) -> (i32, i32, i32) {
    %c0_i32 = arith.constant 0 : i32
    %c0_i32_0 = arith.constant 0 : i32
    return %arg1, %arg0, %c0_i32 : i32, i32, i32
  }
  func.func @transform_2(%arg0: i32, %arg1: i32) -> (i32, i32, i32) {
    %c0_i32 = arith.constant 0 : i32
    %c0_i32_0 = arith.constant 0 : i32
    return %arg1, %arg0, %c0_i32 : i32, i32, i32
  }
  func.func @transform_3(%arg0: i32, %arg1: i32) -> (i32, i32, i32) {
    %c0_i32 = arith.constant 0 : i32
    %c0_i32_0 = arith.constant 0 : i32
    return %arg1, %arg0, %c0_i32 : i32, i32, i32
  }
  func.func @transform_4(%arg0: i32, %arg1: i32) -> (i32, i32, i32) {
    %c0_i32 = arith.constant 0 : i32
    %c0_i32_0 = arith.constant 0 : i32
    return %arg1, %arg0, %c0_i32 : i32, i32, i32
  }
}

</mosaic_0001>

<bundles_post_ra>
// kernel: tpu_custom_call.1
= control target key start
LH: loop header
LB: loop body
LE: loop exit
PB: predicated region body
PF: predicated region fallthrough
CT: control target
= control target key end

     0   :  { %10 = vsyncpa [#allocation6], 0  ;;  %s1117_s0 = inlined_call_operand.hbm [shape: f32[8,96], index: 0, kind: input, shape index: {}]   ;;  %s1118_s1 = inlined_call_operand.hbm [shape: f32[2,8,128], index: 1, kind: input, shape index: {}]   ;;  %s1119_s2 = inlined_call_operand.hbm [shape: f32[2,8,128], index: 2, kind: input, shape index: {}]   ;;  %s1120_s3 = inlined_call_operand.hbm [shape: f32[2,8,128], index: 3, kind: output, shape index: {0}]   ;;  %s1121_s4 = inlined_call_operand.hbm [shape: f32[2,8,128], index: 4, kind: output, shape index: {1}]  }
   0x1   :  { %11 = vsyncpa [#allocation9], 0 }
   0x2   :  { %13 = vsyncpa [#allocation9 + $0x1], 0 }
   0x3   :  { %14 = vsyncpa [#allocation7], 0 }
   0x4   :  { %16 = vsyncpa [#allocation7 + $0x1], 0 }
   0x5   :  { %17 = vsyncpa [#allocation13], 0 }
   0x6   :  { %19 = vsyncpa [#allocation13 + $0x1], 0  ;;  %s883_s15 = smov 0   ;;  %s885_s16 = smov 0  }
   0x7   :  { %s887_s17 = smov 0   ;;  %s889_s18 = smov 0  }
   0x8   :  { %s891_s19 = smov 0   ;;  %s893_s20 = smov 0  }
   0x9 LB: > { %s34_s21 = sadd.s32 1, %s842_s19  ;;  %s72_s22 = sadd.s32 1, %s834_s17  ;;  %s846_s20 = sphi %s893_s20, %s25_s20   ;;  %s842_s19 = sphi %s891_s19, %s1144_s19   ;;  %s838_s18 = sphi %s889_s18, %s1143_s18   ;;  %s834_s17 = sphi %s887_s17, %s1142_s17   ;;  %s830_s16 = sphi %s885_s16, %s1141_s16   ;;  %s826_s15 = sphi %s883_s15, %s1140_s15  }
   0xa   : > { %p35_p0 = scmp.ge.s32.totalorder %s34_s21, 2  ;;  %p79_p1 = scmp.ne.s32.totalorder %s834_s17, %s830_s16 }
   0xb   : > { %p80_p2 = scmp.eq.s32.totalorder %s846_s20, 0  ;;  %p593_p5 = scmp.lt.s32.totalorder %s846_s20, 2 }
   0xc   : > { %s1146_s21 = smov (%p35_p0, %s34_s21), 0  ;;  %s206_s24 = sand.u32 1, %s846_s20  }
   0xd   : > { %p81_p4 = por %p80_p2, %p79_p1  ;;  %s67_s23 = ssub.s32 %s842_s19, %s1146_s21 }
   0xe   : > { %p70_p6 = scmp.eq.s32.totalorder %s67_s23, 0  ;;  %s208_s25 = sand.u32 1, %s834_s17  }
   0xf   : > { %s546_s26 = sshll.u32 %s842_s19, 7  ;;  %s933_s28 = sshll.u32 %s208_s25, 3 }
  0x10   : > { %s931_s27 = scalar_select %p70_p6, %s834_s17, %s72_s22  }
  0x11   : > { %s216_s5 = scalar_lea.hbm %s1118_s1, %s546_s26  ;;  %p940_p7 = pnand %p593_p5, %p81_p4 }
  0x12   : > { %s210_s7 = scalar_lea.vmem [#allocation8], %s933_s28  ;;  %s945_s9 = scalar_lea.sflag [#allocation9], %s206_s24 }
  0x13   : > { %s218_s8 = sshll.u32 %s210_s7, 4  ;;  %p652_p8 = pneg %p940_p7  ;;  %s219_s8 = int_to_ptr.vmem [resolvable:$true] %s218_s8 }
  0x14   : > { %s663_s10 = scalar_lea.vmem %s219_s8, 128  ;;  %s848_s11 = smov [#allocation8]  }
  0x15   : > { %p664_p9 = scmp.ne.s32.totalorder %s219_s8, %s663_s10  ;;  %s668_s12 = sshll.u32 %s848_s11, 4  ;;  %s669_s12 = int_to_ptr.vmem [resolvable:$false] %s668_s12 }
  0x16   : > { %s670_s13 = scalar_lea.vmem %s669_s12, 256  ;;  %p671_p12 = scmp.lt.s32.totalorder %s219_s8, %s669_s12 }
  0x17   : > { %p666_p10 = pnand %p664_p9, %p652_p8  ;;  %p672_p13 = scmp.lt.s32.totalorder %s670_s13, %s663_s10 }
  0x19   : > { %p667_p11 = pneg %p666_p10  ;;  %p673_p0 = por %p672_p13, %p671_p12 }
  0x1b   : > { %p674_p2 = pnand %p673_p0, %p667_p11 }
  0x1d   : > { %677 = shalt.err (!%p674_p2)
}
  0x1e   : > { %581 = dma.hbm_to_vmem [thread:$0]  (!%p940_p7), %s216_s5, 128, %s219_s8, %s945_s9  }
  0x1f   : > { %s956_s14 = sadd.s32 4294967295, %s846_s20   ;;  %s541_s22 = sadd.s32 4294967294, %s846_s20  }
  0x20   : > { %p85_p4 = scmp.ne.s32.totalorder %s830_s16, %s826_s15  ;;  %p1122_p5 = scmp.eq.s32.totalorder %s956_s14, 0 }
  0x21   : > { %p139_p6 = scmp.eq.s32.totalorder %s956_s14, 1  ;;  %p145_p9 = scmp.eq.s32.totalorder %s541_s22, 1 }
  0x22   : > { %p542_p10 = scmp.ge.s32.totalorder %s846_s20, 1  ;;  %p966_p11 = por %p1122_p5, %p85_p4 }
  0x23   : > { %p973_p12 = por %p139_p6, %p79_p1  ;;  %p977_p13 = por %p145_p9, %p85_p4 }
  0x24   : > { %s1127_s23 = scalar_select %p966_p11, 1, 0 }
  0x25   : > { %s1128_s24 = scalar_select %p973_p12, 1, 0 }
  0x26   : > { %s1129_s25 = scalar_select %p977_p13, 1, 0 }
  0x27   : > { %p180_p0 = scmp.lt.s32.totalorder %s846_s20, 3  ;;  %s235_s5 = scalar_lea.hbm %s1119_s2, %s546_s26 }
  0x28   : > { %s849_s8 = smov [#allocation5]   ;;  %s229_s11 = scalar_lea.vmem [#allocation10], %s933_s28 }
  0x29   : > { %p987_p2 = pnand %p542_p10, %p180_p0  ;;  %s195_s10 = sshll.u32 %s849_s8, 4  ;;  %s196_s10 = int_to_ptr.vmem [resolvable:$true] %s195_s10 }
  0x2a   : > { %s237_s12 = sshll.u32 %s229_s11, 4  ;;  %s850_s22 = smov [#allocation10]   ;;  %s238_s12 = int_to_ptr.vmem [resolvable:$true] %s237_s12 }
  0x2b   : > { %s691_s13 = scalar_lea.vmem %s238_s12, 128  ;;  %s696_s26 = sshll.u32 %s850_s22, 4  ;;  %s697_s26 = int_to_ptr.vmem [resolvable:$false] %s696_s26 }
  0x2c   : > { %p692_p4 = scmp.ne.s32.totalorder %s238_s12, %s691_s13  ;;  %s698_s29 = scalar_lea.vmem %s697_s26, 256 }
  0x2d   : > { %p699_p10 = scmp.lt.s32.totalorder %s238_s12, %s697_s26  ;;  %p700_p0 = scmp.lt.s32.totalorder %s698_s29, %s691_s13 }
  0x2e   : > { %p694_p6 = pnand %p692_p4, %p652_p8 }
  0x2f   : > { %p701_p3 = por %p700_p0, %p699_p10 }
  0x30   : > { %p695_p9 = pneg %p694_p6 }
  0x32   : > { %p702_p5 = pnand %p701_p3, %p695_p9 }
  0x34   : > { %705 = shalt.err (!%p702_p5)
}
  0x35   : > { %584 = dma.hbm_to_vmem [thread:$0]  (!%p940_p7), %s235_s5, 128, %s238_s12, %s945_s9  }
  0x36   : > { %p1131_p1 = scmp.eq.s32.totalorder %s956_s14, 0  ;;  %p1132_p8 = pneg %p987_p2 }
  0x37   : > { %s717_s28 = scalar_lea.vmem %s196_s10, 128  ;;  %p725_p0 = scmp.lt.s32.totalorder %s196_s10, %s196_s10 }
  0x38   : > { %p575_p4 = pnand %p1132_p8, %p1131_p1  ;;  %p718_p13 = scmp.ne.s32.totalorder %s196_s10, %s717_s28 }
  0x39   : > { %p726_p10 = scmp.lt.s32.totalorder %s717_s28, %s717_s28 }
  0x3a   : > { %p708_p6 = pneg %p575_p4 }
  0x3b   : > { %p727_p3 = por %p726_p10, %p725_p0 }
  0x3c   : > { %p720_p12 = pnand %p718_p13, %p708_p6 }
  0x3e   : > { %p721_p11 = pneg %p720_p12 }
  0x40   : > { %p728_p5 = pnand %p727_p3, %p721_p11 }
  0x42   : > { %731 = shalt.err (!%p728_p5)
}
  0x43   : > { %577 = dma.hbm_to_vmem [thread:$0]  (!%p575_p4), %s1117_s0, 128, %s196_s10, [#allocation6]  }
  0x44   : > { %246 = sbr.rel (%p987_p2) target bundleno = 369 (0x171), region = 32  ;;  %p1133_p7 = scmp.eq.s32.totalorder (!%p987_p2), %s956_s14, 0 }
  0x49   : > { %809 = dma.done.wait (%p1133_p7), [#allocation6], 128   ;;  %p1134_p1 = pmov %p1133_p7 }
  0x4a   : > { %s252_s9 = sand.u32 1, %s956_s14   ;;  %s1016_s5 = sand.u32 1, %s830_s16  }
  0x4b   : > { %811 = vsyncadd (%p1134_p1), [#allocation6], 4294967168  ;;  %s1019_s8 = sshll.u32 %s1016_s5, 3  ;;  %s253_s10 = scalar_lea.sflag [#allocation9], %s252_s9 }
  0x4c   : > { %s256_s11 = scalar_lea.vmem [#allocation8], %s1019_s8  ;;  %p1135_p11 = scmp.ne.s32.totalorder %s1127_s23, 0 }
  0x4e   : > { %813 = dma.done.wait (%p1135_p11), %s253_s10, 256  }
  0x4f   : > { %815 = vsyncadd (%p1135_p11), %s253_s10, 4294967040  ;;  %s265_s7 = scalar_lea.vmem [#allocation10], %s1019_s8  ;;  %s292_s12 = scalar_lea.vmem [#allocation11], %s1019_s8 }
  0x50   : > { %s1125_s13 = scalar_lea.vmem [#allocation12], %s1019_s8  ;;  %p555_p12 = scmp.ne.s32.totalorder %s838_s18, 0 }
  0x51   : > { %s851_s14 = smov (!%p555_p12), 96   ;;  %s852_s22 = smov (!%p555_p12), 32  }
  0x52   : > { %303 = sbr.rel (%p555_p12) target bundleno = 211 (0xd3), region = 48  ;;  %s853_s26 = smov (!%p555_p12), 64  }
  0x57   : > { %v304_v0 = vld [vmem:[#allocation5] sm:$0xff]  ;;  %vm315_vm0 = vcmask 261120   ;;  %vm317_vm1 = vcmask 523264   ;;  %vm319_vm2 = vcmask 785408  }
  0x58   : > { %312 = vrot.lane.b32.xlu1 %v304_v0, %s851_s14  ;;  %306 = vrot.lane.b32.xlu0 %v304_v0, %s852_s22 }
  0x5c   : > { %309 = vrot.lane.b32.xlu0 %v304_v0, %s853_s26 }
  0xca   : > { %v313_v1 = vpop.permute.xlu1 %312  ;;  %v307_v2 = vpop.permute.xlu0 %306 }
  0xcb   : > { %v322_v3 = vsel %vm315_vm0, %v313_v1, %v304_v0  ;;  %v316_v4 = vsel %vm315_vm0, %v304_v0, %v307_v2 }
  0xcc   : > { %v323_v5 = vsel %vm317_vm1, %v322_v3, %v307_v2 }
  0xce   : > { %v310_v6 = vpop.permute.xlu0 %309 }
  0xcf   : > { %v318_v7 = vsel %vm317_vm1, %v316_v4, %v310_v6  ;;  %v324_v8 = vsel %vm319_vm2, %v323_v5, %v310_v6  ;;  %v326_v9 = vsel %vm315_vm0, %v310_v6, %v313_v1 }
  0xd0   : > { %v320_v10 = vsel %vm319_vm2, %v318_v7, %v313_v1  ;;  %325 = vst [vmem:[#allocation3] sm:$0xff] %v324_v8  ;;  %v327_v11 = vsel %vm317_vm1, %v326_v9, %v304_v0 }
  0xd1   : > { %321 = vst [vmem:[#allocation2] sm:$0xff] %v320_v10  ;;  %v328_v12 = vsel %vm319_vm2, %v327_v11, %v307_v2 }
  0xd2   : > { %329 = vst [vmem:[#allocation4] sm:$0xff] %v328_v12 }
  0xd3 PF: > { %v330_v13 = vld [vmem:[%s256_s11] sm:$0xff]  ;;  %s854_s23 = smov 127   ;;  %s855_s29 = smov 1   ;;  %v344_v14 = vld [vmem:[%s265_s7] sm:$0xff] }
  0xd4   : > { %331 = vrot.lane.b32.xlu0 %v330_v13, %s854_s23  ;;  %333 = vrot.lane.b32.xlu1 %v330_v13, %s855_s29  ;;  %s558_s28 = sshll.u32 %s838_s18, 7  ;;  %s378_s6 = sshll.u32 %s292_s12, 4  ;;  %s1044_s6 = int_to_ptr.vmem [resolvable:$true] %s378_s6 }
  0xd5   : > { %s1042_s10 = scalar_lea.hbm %s1120_s3, %s558_s28  ;;  %s1048_s11 = sshll.u32 %s1125_s13, 4  ;;  %s393_s11 = int_to_ptr.vmem [resolvable:$true] %s1048_s11 }
  0xd6   : > { %s359_s7 = scalar_lea.sflag [#allocation7], %s1016_s5  ;;  %s732_s14 = scalar_lea.vmem %s1044_s6, 128 }
  0xd7   : > { %v337_v16 = vld [vmem:[#allocation3] sm:$0xff]  ;;  %p733_p13 = scmp.ne.s32.totalorder %s1044_s6, %s732_s14  ;;  %p1136_p2 = scmp.ne.s32.totalorder %s1128_s24, 0 }
  0xd8   : > { %345 = vrot.lane.b32.xlu0 %v344_v14, %s854_s23  ;;  %347 = vrot.lane.b32.xlu1 %v344_v14, %s855_s29  ;;  %v335_v15 = vld [vmem:[#allocation2] sm:$0xff]  ;;  %s856_s22 = smov [#allocation11]  }
  0xd9   : > { %v340_v17 = vld [vmem:[#allocation4] sm:$0xff]  ;;  %v336_v18 = vmul.f32 %v335_v15, %v330_v13  ;;  %v350_v23 = vmul.f32 %v344_v14, %v335_v15  ;;  %p734_p9 = pnand %p733_p13, %p1136_p2  ;;  %s736_s26 = sshll.u32 %s856_s22, 4  ;;  %s737_s26 = int_to_ptr.vmem [resolvable:$false] %s736_s26 }
  0xda   : > { %s738_s23 = scalar_lea.vmem %s737_s26, 256  ;;  %p739_p4 = scmp.lt.s32.totalorder %s1044_s6, %s737_s26 }
  0xdb   : > { %p735_p8 = pneg %p734_p9  ;;  %p740_p6 = scmp.lt.s32.totalorder %s738_s23, %s732_s14 }
  0xdd   : > { %p741_p0 = por %p740_p6, %p739_p4 }
  0xdf   : > { %p742_p10 = pnand %p741_p0, %p735_p8 }
 0x146   : > { %v332_v19 = vpop.permute.xlu0 %331  ;;  %v334_v20 = vpop.permute.xlu1 %333 }
 0x147   : > { %v338_v21 = vmul.f32 %v337_v16, %v332_v19  ;;  %v341_v22 = vmul.f32 %v340_v17, %v334_v20 }
 0x149   : > { %v339_v24 = vadd.f32 %v338_v21, %v336_v18 }
 0x14a   : > { %v346_v25 = vpop.permute.xlu0 %345  ;;  %v348_v26 = vpop.permute.xlu1 %347 }
 0x14b   : > { %v342_v27 = vadd.f32 %v341_v22, %v339_v24  ;;  %v352_v28 = vmul.f32 %v346_v25, %v337_v16  ;;  %v355_v29 = vmul.f32 %v348_v26, %v340_v17 }
 0x14d   : > { %343 = vst [vmem:[%s292_s12] sm:$0xff] %v342_v27  ;;  %v353_v30 = vadd.f32 %v352_v28, %v350_v23 }
 0x14e   : > { %745 = shalt.err (!%p742_p10)
}
 0x14f   : > { %s746_s12 = scalar_lea.hbm %s1042_s10, 128  ;;  %s750_s9 = scalar_lea.hbm %s1120_s3, 256 }
 0x150   : > { %p747_p3 = scmp.ne.s32.totalorder %s1042_s10, %s746_s12  ;;  %p751_p1 = scmp.lt.s32.totalorder %s1042_s10, %s1120_s3 }
 0x151   : > { %p752_p11 = scmp.lt.s32.totalorder %s750_s9, %s746_s12 }
 0x152   : > { %p748_p5 = pnand %p747_p3, %p1136_p2 }
 0x153   : > { %p753_p12 = por %p752_p11, %p751_p1 }
 0x154   : > { %p749_p7 = pneg %p748_p5 }
 0x156   : > { %p754_p13 = pnand %p753_p12, %p749_p7 }
 0x158   : > { %757 = shalt.err (!%p754_p13)
}
 0x159   : > { %570 = dma.vmem_to_hbm [thread:$0]  (%p1136_p2), %s1044_s6, 128, %s1042_s10, %s359_s7   ;;  %v356_v31 = vadd.f32 %v355_v29, %v353_v30 }
 0x15a   : > { %s390_s13 = scalar_lea.hbm %s1121_s4, %s558_s28  ;;  %s1137_s23 = scalar_lea.vmem [#allocation12], %s1019_s8 }
 0x15b   : > { %357 = vst [vmem:[%s1137_s23] sm:$0xff] %v356_v31  ;;  %s364_s12 = scalar_lea.sflag [#allocation13], %s1016_s5  ;;  %s758_s29 = scalar_lea.vmem %s393_s11, 128 }
 0x15c   : > { %p759_p9 = scmp.ne.s32.totalorder %s393_s11, %s758_s29  ;;  %s857_s30 = smov [#allocation12]  }
 0x15d   : > { %s762_s9 = sshll.u32 %s857_s30, 4  ;;  %s763_s9 = int_to_ptr.vmem [resolvable:$false] %s762_s9 }
 0x15e   : > { %p760_p8 = pnand %p759_p9, %p1136_p2  ;;  %s764_s22 = scalar_lea.vmem %s763_s9, 256 }
 0x15f   : > { %p765_p6 = scmp.lt.s32.totalorder %s393_s11, %s763_s9  ;;  %p766_p0 = scmp.lt.s32.totalorder %s764_s22, %s758_s29 }
 0x160   : > { %p761_p4 = pneg %p760_p8 }
 0x161   : > { %p767_p10 = por %p766_p0, %p765_p6 }
 0x163   : > { %p768_p3 = pnand %p767_p10, %p761_p4 }
 0x165   : > { %771 = shalt.err (!%p768_p3)
}
 0x166   : > { %s772_s18 = scalar_lea.hbm %s390_s13, 128  ;;  %s776_s28 = scalar_lea.hbm %s1121_s4, 256 }
 0x167   : > { %p773_p5 = scmp.ne.s32.totalorder %s390_s13, %s772_s18  ;;  %p777_p11 = scmp.lt.s32.totalorder %s390_s13, %s1121_s4 }
 0x168   : > { %p778_p12 = scmp.lt.s32.totalorder %s776_s28, %s772_s18 }
 0x169   : > { %p774_p7 = pnand %p773_p5, %p1136_p2 }
 0x16a   : > { %p779_p13 = por %p778_p12, %p777_p11 }
 0x16b   : > { %p775_p1 = pneg %p774_p7 }
 0x16d   : > { %p780_p9 = pnand %p779_p13, %p775_p1 }
 0x16f   : > { %783 = shalt.err (!%p780_p9)
}
 0x170   : > { %571 = dma.vmem_to_hbm [thread:$0]  (%p1136_p2), %s393_s11, 128, %s390_s13, %s364_s12  }
 0x171 PF: > { %s404_s7 = sand.u32 1, %s826_s15   ;;  %p1138_p8 = scmp.ne.s32.totalorder %s1129_s25, 0 }
 0x172   : > { %p1139_p4 = scmp.ge.s32.totalorder %s846_s20, 2  ;;  %s405_s14 = scalar_lea.sflag [#allocation7], %s404_s7 }
 0x174   : > { %p586_p6 = pnand %p1139_p4, %p1138_p8 }
 0x176   : > { %p587_p0 = pneg %p586_p6 }
 0x178   : > { %817 = dma.done.wait (%p587_p0), %s405_s14, 128  }
 0x179   : > { %819 = vsyncadd (%p587_p0), %s405_s14, 4294967168  ;;  %s414_s26 = scalar_lea.sflag [#allocation13], %s404_s7 }
 0x17a   : > { %821 = dma.done.wait (%p587_p0), %s414_s26, 128  }
 0x17b   : > { %823 = vsyncadd (%p587_p0), %s414_s26, 4294967168  ;;  %s25_s20 = sadd.s32 1, %s846_s20   ;;  %s1140_s15 = smov %s830_s16 }
 0x17c   : > { %p22_p10 = scmp.ge.s32.totalorder %s25_s20, 4   ;;  %s1141_s16 = smov %s834_s17 }
 0x17d   : > { %s1142_s17 = smov %s931_s27  ;;  %s1143_s18 = smov %s842_s19 }
 0x17e   : > { %s1144_s19 = smov %s1146_s21  ;;  %24 = sbr.rel (!%p22_p10) target bundleno = 9 (0x9), region = 115 }
 0x183   :  { %419 = vsyncpa [#allocation6], 1 }
 0x184   :  { %421 = vsyncpa [#allocation6 + $0x1], 1 }
 0x185   :  { %422 = vsyncpa [#allocation9], 1 }
 0x186   :  { %424 = vsyncpa [#allocation9 + $0x1], 1 }
 0x187   :  { %425 = vsyncpa [#allocation7], 1 }
 0x188   :  { %427 = vsyncpa [#allocation7 + $0x1], 1 }
 0x189   :  { %428 = vsyncpa [#allocation13], 1 }
 0x18a   :  { %430 = vsyncpa [#allocation13 + $0x1], 1 }

</bundles_post_ra>
